<compile_context>
chip_gen: v6e
topology: v6e:2x2x1
jax: 0.10.0
libtpu: 0.0.40
codegen_flags: <defaults>
</compile_context>

<pallas_src>
import math
from functools import partial

import jax
import jax.numpy as jnp
from jax.experimental import pallas as pl
from jax.experimental.pallas import tpu as pltpu

_LOG3 = math.log(3.0)

# sigma <= 3**(1 + 1e-5) - 1 < 2.0001  =>  |coef| = 0.5 / sigma^2 > 0.1249.
# For |i - j| >= _SKIP_GAP: exp(coef * |i-j|^2) <= exp(-0.1249 * 1024) ~ 3e-56,
# far below the smallest f32 subnormal -> exactly 0.  Column chunks entirely
# beyond this gap can skip the exp and store zeros without changing anything.
_SKIP_GAP = 32

# Cap one output block (diminishing returns past ~8-16 MiB of HBM writeback).
_MAX_BLOCK_BYTES = 16 << 20


def _prior_kernel(coef_ref, o_ref):
    """Dense path: one (Bt, H, TL, L) output block per grid step."""
    tl, l = o_ref.shape[2], o_ref.shape[3]
    r0 = (pl.program_id(1) * tl).astype(jnp.float32)

    # (i - j) for this row tile: single int->float convert + one scalar add.
    base = (jax.lax.broadcasted_iota(jnp.int32, (tl, l), 0)
            - jax.lax.broadcasted_iota(jnp.int32, (tl, l), 1)).astype(jnp.float32)
    diff = base + r0
    dist2 = diff * diff                                     # (TL, L)

    coef = coef_ref[...]                                    # (Bt, H, TL, 1) = -0.5/sigma^2
    prior = jnp.exp(dist2[None, None, :, :] * coef)         # (Bt, H, TL, L)

    denom = jnp.sum(prior, axis=-1, keepdims=True)          # (Bt, H, TL, 1)
    inv = pl.reciprocal(denom, approx=True)                 # EUP slot (~free)
    inv = inv * (2.0 - denom * inv)                         # Newton 1
    inv = inv * (2.0 - denom * inv)                         # Newton 2 (per-row, negligible)
    o_ref[...] = (prior * inv).astype(o_ref.dtype)


def _prior_kernel_banded(coef_ref, o_ref, prior_ref, denom_ref, *, cw):
    """Banded path: process the L (lane) axis in `cw`-wide column chunks and
    skip exp / store zeros for chunks entirely outside the Gaussian band."""
    bt, h, tl, l = o_ref.shape
    n_chunks = l // cw

    r0 = pl.program_id(1) * tl                              # first query row of this tile
    r_last = r0 + (tl - 1)
    r0f = r0.astype(jnp.float32)

    coef = coef_ref[...]                                    # (Bt, H, TL, 1)
    base = (jax.lax.broadcasted_iota(jnp.int32, (tl, cw), 0)
            - jax.lax.broadcasted_iota(jnp.int32, (tl, cw), 1)).astype(jnp.float32)

    denom_ref[...] = jnp.zeros_like(denom_ref)

    def chunk_gap(c0):
        c_last = c0 + cw - 1
        return jnp.maximum(jnp.maximum(c0 - r_last, r0 - c_last), 0)

    # Pass 1: exp + running row-sum for in-band chunks only.
    for c in range(n_chunks):
        c0 = c * cw
        in_band = chunk_gap(c0) < _SKIP_GAP

        @pl.when(in_band)
        def _():
            diff = base + (r0f - jnp.float32(c0))
            p = jnp.exp((diff * diff)[None, None, :, :] * coef)   # (Bt, H, TL, cw)
            prior_ref[:, :, :, c0:c0 + cw] = p
            denom_ref[...] += jnp.sum(p, axis=-1, keepdims=True)

    denom = denom_ref[...]
    inv = pl.reciprocal(denom, approx=True)
    inv = inv * (2.0 - denom * inv)
    inv = inv * (2.0 - denom * inv)

    # Pass 2: normalize in-band chunks, zero-fill far chunks (they underflow
    # to exactly 0 anyway, so this is bitwise identical to the dense path).
    for c in range(n_chunks):
        c0 = c * cw
        gap = chunk_gap(c0)

        @pl.when(gap < _SKIP_GAP)
        def _():
            o_ref[:, :, :, c0:c0 + cw] = (
                prior_ref[:, :, :, c0:c0 + cw] * inv).astype(o_ref.dtype)

        @pl.when(gap >= _SKIP_GAP)
        def _():
            o_ref[:, :, :, c0:c0 + cw] = jnp.zeros((bt, h, tl, cw), o_ref.dtype)


def _round_up(x, m):
    return -(-x // m) * m


def _step_vmem_bytes(bt, tl, n_heads, seq_len, out_elem):
    """Per-grid-step VMEM footprint: double-buffered out + coef blocks (the
    (.., TL, 1) coef block is lane-padded x128), two full f32 temporaries
    (prior + product/scratch) and the lane-padded row-sum scratch."""
    out_block = bt * n_heads * tl * seq_len * out_elem
    coef_block = bt * n_heads * _round_up(tl, 8) * 128 * 4
    f32_tmp = 2 * bt * n_heads * tl * seq_len * 4
    return 2 * (out_block + coef_block) + f32_tmp + coef_block


def _pick_tiles(batch, n_heads, seq_len, out_elem, budget_bytes):
    """(batch_tile, row_tile) so one step's VMEM footprint fits budget_bytes."""
    min_tl = 16 if out_elem < 4 else 8      # dense (16,128)/(8,128) stores

    def fits(bt, tl):
        return (bt * n_heads * tl * seq_len * out_elem <= _MAX_BLOCK_BYTES
                and _step_vmem_bytes(bt, tl, n_heads, seq_len, out_elem)
                <= budget_bytes)

    if seq_len <= min_tl or fits(1, seq_len):
        row_tile = seq_len
    else:
        row_tile = min_tl
        while row_tile * 2 <= seq_len and fits(1, row_tile * 2):
            row_tile *= 2

    batch_tile = 1
    if row_tile == seq_len and batch > 1:
        # Keep >= min(B, 4) grid steps so megacore / 2-TC parts stay busy.
        bt_cap = max(1, batch // min(batch, 4))
        for cand in range(min(batch, bt_cap), 0, -1):
            if batch % cand == 0 and fits(cand, seq_len):
                batch_tile = cand
                break
    return batch_tile, row_tile


def _pick_col_chunk(seq_len, row_tile):
    """Column-chunk width for the banded kernel, or None for the dense one."""
    if row_tile >= seq_len or seq_len < 512 or seq_len % 256 != 0:
        return None
    cw = 256
    while seq_len // cw > 16 and seq_len % (2 * cw) == 0:
        cw *= 2
    return cw if seq_len // cw <= 32 else None


def short_anomaly_attention(x, w, b, *, out_dtype=jnp.bfloat16, row_tile=None):
    """x: (B, L, d_model); w: (d_model, n_heads); b: (n_heads,).

    Returns the normalized Gaussian prior, shape (B, n_heads, L, L).
    """
    B, L, _ = x.shape
    H = w.shape[1]

    # Sigma projection + pointwise epilogue in XLA (far too small for the MXU),
    # folded into the per-row Gaussian coefficient coef = -0.5 / sigma^2 and
    # passed pre-transposed so the hot kernel has no divides / transposes.
    # The 1/(sqrt(2*pi)*sigma) prefactor cancels in the row normalization.
    xf = x.astype(jnp.float32)
    sigma = jnp.einsum("bld,dh->blh", xf, w.astype(jnp.float32)) + b.astype(jnp.float32)
    sigma = jax.nn.sigmoid(sigma * 5.0) + 1e-5
    sigma = jnp.exp(sigma * _LOG3) - 1.0                    # == 3 ** sigma - 1
    coef = -0.5 / (sigma * sigma)                           # (B, L, H)
    coef = jnp.transpose(coef, (0, 2, 1))[..., None]        # (B, H, L, 1)
    coef = coef.astype(jnp.float32)

    elem = jnp.dtype(out_dtype).itemsize

    try:
        vmem_cap = int(pltpu.get_tpu_info().vmem_capacity_bytes)
    except Exception:                                       # pragma: no cover
        vmem_cap = 64 << 20                                 # conservative (v7x)
    budget = max(int(vmem_cap * 0.6) - (6 << 20), 8 << 20)

    if row_tile is None:
        bt, tl = _pick_tiles(B, H, L, elem, budget)
    else:
        bt, tl = 1, row_tile                                # test / tuning override

    grid = (pl.cdiv(B, bt), pl.cdiv(L, tl))

    cw = _pick_col_chunk(L, tl)
    if cw is None:
        kernel = _prior_kernel
        scratch = []
    else:
        kernel = partial(_prior_kernel_banded, cw=cw)
        scratch = [pltpu.VMEM((bt, H, tl, L), jnp.float32),   # unnormalized prior
                   pltpu.VMEM((bt, H, tl, 1), jnp.float32)]   # running row-sum

    needed = _step_vmem_bytes(bt, tl, H, L, elem) + (6 << 20)
    vmem_limit = min(max(needed, 32 << 20), (vmem_cap * 3) // 4)
    vmem_limit = max(vmem_limit, needed)                    # never under-provision

    cost = pl.CostEstimate(
        flops=4 * B * H * L * L,
        transcendentals=B * H * L * L,
        bytes_accessed=B * H * L * L * elem + B * H * L * 4)

    # NOTE: pipeline_mode=pl.Buffered(3) on out_specs is a possible further
    # sweep on 128 MiB parts (exposed writeback); left at the default here.
    return pl.pallas_call(
        kernel,
        out_shape=jax.ShapeDtypeStruct((B, H, L, L), out_dtype),
        grid_spec=pltpu.PrefetchScalarGridSpec(
            num_scalar_prefetch=0,
            grid=grid,
            in_specs=[pl.BlockSpec((bt, H, tl, 1), lambda bi, ti: (bi, 0, ti, 0))],
            out_specs=pl.BlockSpec((bt, H, tl, L), lambda bi, ti: (bi, 0, ti, 0)),
            scratch_shapes=scratch,
        ),
        compiler_params=pltpu.CompilerParams(
            dimension_semantics=("parallel", "parallel"),
            vmem_limit_bytes=int(vmem_limit),
        ),
        cost_estimate=cost,
    )(coef)


def _reference(x, w, b):
    # Pure-JAX reference mirroring the PyTorch forward exactly.
    _, L, _ = x.shape
    sigma = jnp.einsum("bld,dh->blh", x, w) + b             # (B, L, H)
    sigma = jnp.transpose(sigma, (0, 2, 1))                 # (B, H, L)
    sigma = jax.nn.sigmoid(sigma * 5.0) + 1e-5
    sigma = jnp.power(3.0, sigma) - 1.0
    sigma = sigma[..., None]                                # (B, H, L, 1)
    ar = jnp.arange(L)
    dist = jnp.abs(ar[:, None] - ar[None, :]).astype(jnp.float32)
    prior = (1.0 / (jnp.sqrt(2.0 * jnp.pi) * sigma)) * jnp.exp(
        -(dist ** 2) / (2.0 * sigma ** 2))
    return prior / jnp.sum(prior, axis=-1, keepdims=True)


if __name__ == "__main__":
    key = jax.random.PRNGKey(0)

    # --- Case 1: small shape, f32 output, strict check vs the reference. ---
    B, L, d_model, n_heads = 2, 16, 32, 4
    k1, k2, k3, key = jax.random.split(key, 4)
    x = jax.random.normal(k1, (B, L, d_model), dtype=jnp.float32)
    # Linear(d_model, n_heads) params, weight stored as (d_model, n_heads) so
    # the projection is x @ W + b.
    w = jax.random.normal(k2, (d_model, n_heads), dtype=jnp.float32) * 0.1
    b = jax.random.normal(k3, (n_heads,), dtype=jnp.float32) * 0.1

    ref = _reference(x, w, b)
    out_f32 = jax.block_until_ready(
        jax.jit(partial(short_anomaly_attention, out_dtype=jnp.float32))(x, w, b))
    assert out_f32.shape == (B, n_heads, L, L)
    assert jnp.allclose(out_f32, ref, atol=1e-5, rtol=1e-5), "f32 mismatch vs reference"

    # --- Case 2: production default (bf16 output halves HBM writeback). ---
    out_bf16 = jax.block_until_ready(jax.jit(short_anomaly_attention)(x, w, b))
    assert out_bf16.dtype == jnp.bfloat16
    assert jnp.allclose(out_bf16.astype(jnp.float32), ref, atol=2e-2, rtol=0.0), \
        "bf16 mismatch vs reference"

    # --- Case 3: larger L exercising the banded column-chunk-skip path. ---
    B2, L2, d2, h2 = 1, 1024, 16, 2
    k1, k2, k3, key = jax.random.split(key, 4)
    x2 = jax.random.normal(k1, (B2, L2, d2), dtype=jnp.float32)
    w2 = jax.random.normal(k2, (d2, h2), dtype=jnp.float32) * 0.1
    b2 = jax.random.normal(k3, (h2,), dtype=jnp.float32) * 0.1
    ref2 = _reference(x2, w2, b2)
    out2 = jax.block_until_ready(
        jax.jit(partial(short_anomaly_attention,
                        out_dtype=jnp.float32, row_tile=256))(x2, w2, b2))
    assert out2.shape == (B2, h2, L2, L2)
    assert jnp.allclose(out2, ref2, atol=1e-5, rtol=1e-5), "banded mismatch vs reference"

    print("KERNEL_OK")
</pallas_src>

<mosaic_0001>
module attributes {stable_mosaic.version = 11 : i64} {
  func.func @_prior_kernel(%arg0: i32, %arg1: i32, %arg2: memref<1x4x16x1xf32, #tpu.memory_space<vmem>>, %arg3: memref<1x4x16x16xf32, #tpu.memory_space<vmem>>) attributes {dimension_semantics = [#tpu.dimension_semantics<parallel>, #tpu.dimension_semantics<parallel>], iteration_bounds = array<i64: 2, 1>, scalar_prefetch = 0 : i64, scratch_operands = 0 : i64, tpu.core_type = #tpu.core_type<tc>, window_params = [{transform_indices = @transform_0, window_bounds = array<i64: 1, 4, 16, 1>}, {transform_indices = @transform_1, window_bounds = array<i64: 1, 4, 16, 16>}]} {
    %c16_i32 = arith.constant 16 : i32
    %0 = arith.muli %arg1, %c16_i32 : i32
    %1 = arith.sitofp %0 : i32 to f32
    %2 = tpu.iota {dimensions = array<i32: 0>} : vector<16x16xi32>
    %3 = tpu.iota {dimensions = array<i32: 1>} : vector<16x16xi32>
    %4 = arith.subi %2, %3 : vector<16x16xi32>
    %5 = arith.sitofp %4 : vector<16x16xi32> to vector<16x16xf32>
    %6 = vector.broadcast %1 : f32 to vector<16x16xf32>
    %7 = arith.addf %5, %6 : vector<16x16xf32>
    %8 = arith.mulf %7, %7 : vector<16x16xf32>
    %c0 = arith.constant 0 : index
    %c0_0 = arith.constant 0 : index
    %c0_1 = arith.constant 0 : index
    %c0_2 = arith.constant 0 : index
    %9 = vector.load %arg2[%c0, %c0_0, %c0_1, %c0_2] : memref<1x4x16x1xf32, #tpu.memory_space<vmem>>, vector<1x4x16x1xf32>
    %10 = vector.shape_cast %8 : vector<16x16xf32> to vector<1x1x16x16xf32>
    %11 = vector.broadcast %10 : vector<1x1x16x16xf32> to vector<1x4x16x16xf32>
    %12 = vector.broadcast %9 : vector<1x4x16x1xf32> to vector<1x4x16x16xf32>
    %13 = arith.mulf %11, %12 : vector<1x4x16x16xf32>
    %14 = math.exp %13 : vector<1x4x16x16xf32>
    %cst = arith.constant dense<0.000000e+00> : vector<1x4x16xf32>
    %15 = vector.multi_reduction <add>, %14, %cst [3] : vector<1x4x16x16xf32> to vector<1x4x16xf32>
    %16 = vector.shape_cast %15 : vector<1x4x16xf32> to vector<1x4x16x1xf32>
    %17 = tpu.reciprocal %16 {approx = true} : vector<1x4x16x1xf32> -> vector<1x4x16x1xf32>
    %18 = arith.mulf %16, %17 : vector<1x4x16x1xf32>
    %cst_3 = arith.constant 2.000000e+00 : f32
    %19 = vector.broadcast %cst_3 : f32 to vector<1x4x16x1xf32>
    %20 = arith.subf %19, %18 : vector<1x4x16x1xf32>
    %21 = arith.mulf %17, %20 : vector<1x4x16x1xf32>
    %22 = arith.mulf %16, %21 : vector<1x4x16x1xf32>
    %cst_4 = arith.constant 2.000000e+00 : f32
    %23 = vector.broadcast %cst_4 : f32 to vector<1x4x16x1xf32>
    %24 = arith.subf %23, %22 : vector<1x4x16x1xf32>
    %25 = arith.mulf %21, %24 : vector<1x4x16x1xf32>
    %26 = vector.broadcast %25 : vector<1x4x16x1xf32> to vector<1x4x16x16xf32>
    %27 = arith.mulf %14, %26 : vector<1x4x16x16xf32>
    %c0_5 = arith.constant 0 : index
    %c0_6 = arith.constant 0 : index
    %c0_7 = arith.constant 0 : index
    %c0_8 = arith.constant 0 : index
    %28 = vector.load %arg3[%c0_5, %c0_6, %c0_7, %c0_8] : memref<1x4x16x16xf32, #tpu.memory_space<vmem>>, vector<1x4x16x16xf32>
    tpu.vector_store %arg3[%c0_5, %c0_6, %c0_7, %c0_8], %27 {strides = array<i32>} : memref<1x4x16x16xf32, #tpu.memory_space<vmem>>, vector<1x4x16x16xf32>,
    return
  }
  func.func @transform_0(%arg0: i32, %arg1: i32) -> (i32, i32, i32, i32) {
    %c0_i32 = arith.constant 0 : i32
    %c0_i32_0 = arith.constant 0 : i32
    %c0_i32_1 = arith.constant 0 : i32
    return %arg0, %c0_i32, %arg1, %c0_i32_0 : i32, i32, i32, i32
  }
  func.func @transform_1(%arg0: i32, %arg1: i32) -> (i32, i32, i32, i32) {
    %c0_i32 = arith.constant 0 : i32
    %c0_i32_0 = arith.constant 0 : i32
    %c0_i32_1 = arith.constant 0 : i32
    return %arg0, %c0_i32, %arg1, %c0_i32_0 : i32, i32, i32, i32
  }
}

</mosaic_0001>

<bundles_post_ra>
// kernel: short_anomaly_attention.1
= control target key start
LH: loop header
LB: loop body
LE: loop exit
PB: predicated region body
PF: predicated region fallthrough
CT: control target
= control target key end

     0   :  { %6 = vsyncpa [#allocation3], 0  ;;  %s807_s0 = inlined_call_operand.vmem [shape: f32[2,4,16,1], index: 0, kind: input, shape index: {}]   ;;  %s808_s1 = inlined_call_operand.hbm [shape: f32[2,4,16,16], index: 1, kind: output, shape index: {}]  }
   0x1   :  { %8 = vsyncpa [#allocation3 + $0x1], 0  ;;  %s625_s6 = smov 0   ;;  %s627_s7 = smov 0  }
   0x2   :  { %s629_s8 = smov 0   ;;  %s631_s9 = smov 0  }
   0x3   :  { %s633_s10 = smov 0   ;;  %s635_s11 = smov 0  }
   0x4 LB: > { %s426_s12 = sadd.s32 4294967295, %s609_s11   ;;  %s427_s13 = sadd.s32 4294967294, %s609_s11   ;;  %s609_s11 = sphi %s635_s11, %s14_s11   ;;  %s605_s10 = sphi %s633_s10, %s815_s10   ;;  %s601_s9 = sphi %s631_s9, %s814_s9   ;;  %s597_s8 = sphi %s629_s8, %s813_s8   ;;  %s593_s7 = sphi %s627_s7, %s812_s7   ;;  %s589_s6 = sphi %s625_s6, %s811_s6  }
   0x5   : > { %s26_s14 = sadd.s32 1, %s605_s10  ;;  %s63_s15 = sadd.s32 1, %s597_s8 }
   0x6   : > { %p28_p0 = scmp.ge.s32.totalorder %s26_s14, 2  ;;  %p73_p1 = scmp.ne.s32.totalorder %s597_s8, %s593_s7 }
   0x7   : > { %p74_p2 = scmp.eq.s32.totalorder %s426_s12, 1  ;;  %p79_p3 = scmp.ne.s32.totalorder %s593_s7, %s589_s6 }
   0x8   : > { %s817_s14 = smov (%p28_p0, %s26_s14), 0  ;;  %p80_p5 = scmp.eq.s32.totalorder %s427_s13, 1 }
   0x9   : > { %p665_p4 = por %p74_p2, %p73_p1  ;;  %s58_s17 = ssub.s32 %s605_s10, %s817_s14 }
   0xa   : > { %p430_p6 = scmp.ge.s32.totalorder %s609_s11, 1  ;;  %p61_p7 = scmp.eq.s32.totalorder %s58_s17, 0 }
   0xb   : > { %p672_p8 = por %p80_p5, %p79_p3  ;;  %p111_p9 = scmp.lt.s32.totalorder %s609_s11, 3 }
   0xc   : > { %s678_s19 = scalar_select %p61_p7, %s597_s8, %s63_s15  }
   0xd   : > { %p112_p10 = pnand %p430_p6, %p111_p9 }
   0xe   : > { %p136_p11 = scmp.lt.s32.totalorder (!%p112_p10), %s601_s9, 1  ;;  %s132_s25 = sand.u32 (!%p112_p10), 1, %s593_s7  }
   0xf   : > { %115 = sbr.rel (%p112_p10) target bundleno = 365 (0x16d), region = 24  ;;  %s431_s26 = sshll.u32 (!%p112_p10), %s132_s25, 6 }
  0x10   : > { %s724_s27 = scalar_lea.vmem (!%p112_p10), [#allocation2], %s431_s26  ;;  %s440_s28 = sshll.u32 (!%p112_p10), %s601_s9, 10 }
  0x11   : > { %s347_s29 = sshll.u32 (!%p112_p10), %s724_s27, 4  ;;  %s753_s3 = scalar_lea.hbm (!%p112_p10), %s808_s1, %s440_s28  ;;  %s755_s29 = int_to_ptr.vmem [resolvable:$true] %s347_s29 }
  0x12   : > { %s762_s4 = scalar_lea.sflag (!%p112_p10), [#allocation3], %s132_s25  ;;  %s533_s5 = scalar_lea.vmem (!%p112_p10), %s755_s29, 1024 }
  0x13   : > { %p534_p12 = scmp.ne.s32.totalorder (!%p112_p10), %s755_s29, %s533_s5 }
  0x14   : > { %v611_v0 = vmov 0   ;;  %s137_s20 = scalar_select %p136_p11, %s601_s9, 1  ;;  %v148_v9 = vlaneseq  ;;  %vm234_vm0 = vcmask 130048  }
  0x15   : > { %500 = vset.pattern.permute.xlu1 %v611_v0  ;;  %499 = vset.pattern.permute.xlu0 %v611_v0  ;;  %p535_p13 = pnand %p534_p12, %p665_p4  ;;  %s612_s9 = smov [#allocation2]  }
  0x16   : > { %s439_s21 = sshll.u32 %s137_s20, 6  ;;  %v149_v10 = vshrl.u32 %v148_v9, 7  ;;  %v152_v11 = vand.u32 127, %v148_v9  ;;  %s537_s12 = sshll.u32 %s612_s9, 4  ;;  %s538_s12 = int_to_ptr.vmem [resolvable:$false] %s537_s12 }
  0x17   : > { %s143_s24 = scalar_lea.vmem %s807_s0, %s439_s21  ;;  %p536_p0 = pneg %p535_p13 }
  0x18   : > { %v164_v1 = vld [vmem:[%s143_s24 + $0x10] sm:$0xff]  ;;  %v162_v2 = vld [vmem:[%s143_s24] sm:$0xff]  ;;  %v165_v3 = vld [vmem:[%s143_s24 + $0x18] sm:$0xff]  ;;  %v153_v12 = vsub.s32 %v149_v10, %v152_v11  ;;  %v150_v13 = vadd.s32 8, %v149_v10  ;;  %s539_s13 = scalar_lea.vmem %s538_s12, 2048  ;;  %p540_p1 = scmp.lt.s32.totalorder %s755_s29, %s538_s12 }
  0x19   : > { %182 = vperm.xlu1 %500, %v164_v1   ;;  %172 = vperm.xlu0 %499, %v162_v2   ;;  %v163_v4 = vld [vmem:[%s143_s24 + $0x8] sm:$0xff]  ;;  %v166_v6 = vld [vmem:[%s143_s24 + $0x20] sm:$0xff]  ;;  %v169_v7 = vld [vmem:[%s143_s24 + $0x38] sm:$0xff]  ;;  %p541_p2 = scmp.lt.s32.totalorder %s539_s13, %s533_s5 }
  0x1a   : > { %v167_v5 = vld [vmem:[%s143_s24 + $0x28] sm:$0xff]  ;;  %v168_v8 = vld [vmem:[%s143_s24 + $0x30] sm:$0xff]  ;;  %v155_v14 = vcvt.s32.f32 %v153_v12  ;;  %v154_v15 = vsub.s32 %v150_v13, %v152_v11 }
  0x1b   : > { %p542_p3 = por %p541_p2, %p540_p1 }
  0x1c   : > { %v160_v16 = vmul.f32 %v155_v14, %v155_v14  ;;  %v156_v17 = vcvt.s32.f32 %v154_v15 }
  0x1d   : > { %187 = vperm.xlu1 %500, %v165_v3   ;;  %177 = vperm.xlu0 %499, %v163_v4   ;;  %p543_p5 = pnand %p542_p3, %p536_p0 }
  0x1e   : > { %v161_v22 = vmul.f32 %v156_v17, %v156_v17 }
  0x21   : > { %197 = vperm.xlu1 %500, %v167_v5   ;;  %192 = vperm.xlu0 %499, %v166_v6  }
  0x25   : > { %207 = vperm.xlu1 %500, %v169_v7   ;;  %202 = vperm.xlu0 %499, %v168_v8  }
  0x94   : > { %v183_v18 = vpop.permute.xlu1 %182  ;;  %v173_v19 = vpop.permute.xlu0 %172 }
  0x95   : > { %v212_v20 = vmul.f32 %v183_v18, %v160_v16  ;;  %v210_v21 = vmul.f32 %v173_v19, %v160_v16 }
  0x97   : > { %v222_v23 = vmul.f32 1.442695, %v212_v20  ;;  %v218_v24 = vmul.f32 1.442695, %v210_v21 }
  0x98   : > { %v188_v25 = vpop.permute.xlu1 %187  ;;  %v178_v26 = vpop.permute.xlu0 %177 }
  0x99   : > { %501 = vpow2.f32 %v222_v23  ;;  %v213_v27 = vmul.f32 %v188_v25, %v161_v22  ;;  %v211_v28 = vmul.f32 %v178_v26, %v161_v22 }
  0x9a   : > { %503 = vpow2.f32 %v218_v24 }
  0x9b   : > { %v220_v29 = vmul.f32 1.442695, %v211_v28  ;;  %v224_v30 = vmul.f32 1.442695, %v213_v27 }
  0x9c   : > { %v198_v31 = vpop.permute.xlu1 %197  ;;  %v193_v32 = vpop.permute.xlu0 %192 }
  0x9d   : > { %v215_v33 = vmul.f32 %v198_v31, %v161_v22  ;;  %v214_v34 = vmul.f32 %v193_v32, %v160_v16  ;;  %505 = vpow2.f32 %v220_v29 }
  0x9e   : > { %507 = vpow2.f32 %v224_v30 }
  0x9f   : > { %v226_v35 = vmul.f32 1.442695, %v214_v34  ;;  %v228_v36 = vmul.f32 1.442695, %v215_v33 }
  0xa0   : > { %v208_v37 = vpop.permute.xlu1 %207  ;;  %v203_v38 = vpop.permute.xlu0 %202 }
  0xa1   : > { %v217_v39 = vmul.f32 %v208_v37, %v161_v22  ;;  %v216_v40 = vmul.f32 %v203_v38, %v160_v16  ;;  %509 = vpow2.f32 %v226_v35 }
  0xa2   : > { %511 = vpow2.f32 %v228_v36 }
  0xa3   : > { %v230_v41 = vmul.f32 1.442695, %v216_v40  ;;  %v232_v42 = vmul.f32 1.442695, %v217_v39 }
  0xa5   : > { %513 = vpow2.f32 %v230_v41 }
  0xa6   : > { %v685_v43 = vpop.eup %501  ;;  %515 = vpow2.f32 %v232_v42 }
  0xa7   : > { %v687_v44 = vpop.eup %503  ;;  %v241_v46 = vsel %vm234_vm0, %v685_v43, 0.0 }
  0xa8   : > { %v235_v45 = vsel %vm234_vm0, %v687_v44, 0.0 }
  0xa9   : > { %236 = vadd.xlane.f32.xlu0 %v235_v45 }
  0xaa   : > { %v693_v47 = vpop.eup %505 }
  0xab   : > { %v238_v48 = vsel %vm234_vm0, %v693_v47, 0.0  ;;  %v697_v49 = vpop.eup %507 }
  0xac   : > { %239 = vadd.xlane.f32.xlu1 %v238_v48  ;;  %v244_v51 = vsel %vm234_vm0, %v697_v49, 0.0 }
  0xad   : > { %242 = vadd.xlane.f32.xlu0 %v241_v46 }
  0xae   : > { %v699_v50 = vpop.eup %509 }
  0xaf   : > { %v247_v52 = vsel %vm234_vm0, %v699_v50, 0.0  ;;  %v705_v53 = vpop.eup %511 }
  0xb0   : > { %248 = vadd.xlane.f32.xlu1 %v247_v52  ;;  %v250_v55 = vsel %vm234_vm0, %v705_v53, 0.0 }
  0xb1   : > { %245 = vadd.xlane.f32.xlu0 %v244_v51 }
  0xb2   : > { %v707_v54 = vpop.eup %513 }
  0xb3   : > { %v253_v56 = vsel %vm234_vm0, %v707_v54, 0.0  ;;  %v713_v57 = vpop.eup %515 }
  0xb4   : > { %254 = vadd.xlane.f32.xlu1 %v253_v56  ;;  %v256_v58 = vsel %vm234_vm0, %v713_v57, 0.0 }
  0xb5   : > { %251 = vadd.xlane.f32.xlu0 %v250_v55 }
  0xb9   : > { %257 = vadd.xlane.f32.xlu0 %v256_v58 }
 0x132   : > { %v237_v59 = vpop.xlane.xlu0 %236 }
 0x133   : > { %517 = vrcp.f32 %v237_v59 }
 0x135   : > { %v240_v60 = vpop.xlane.xlu1 %239 }
 0x136   : > { %v243_v61 = vpop.xlane.xlu0 %242  ;;  %519 = vrcp.f32 %v240_v60 }
 0x137   : > { %521 = vrcp.f32 %v243_v61 }
 0x139   : > { %v249_v62 = vpop.xlane.xlu1 %248 }
 0x13a   : > { %v246_v63 = vpop.xlane.xlu0 %245  ;;  %523 = vrcp.f32 %v249_v62 }
 0x13b   : > { %525 = vrcp.f32 %v246_v63 }
 0x13d   : > { %v255_v0 = vpop.xlane.xlu1 %254 }
 0x13e   : > { %v252_v1 = vpop.xlane.xlu0 %251  ;;  %527 = vrcp.f32 %v255_v0 }
 0x13f   : > { %529 = vrcp.f32 %v252_v1 }
 0x140   : > { %v518_v2 = vpop.eup %517 }
 0x141   : > { %v267_v3 = vmul.f32 %v518_v2, %v237_v59 }
 0x142   : > { %v717_v4 = vpop.xlane.xlu0 %257 }
 0x143   : > { %v275_v5 = vsub.f32 2.0, %v267_v3  ;;  %531 = vrcp.f32 %v717_v4  ;;  %v520_v6 = vpop.eup %519 }
 0x144   : > { %v522_v7 = vpop.eup %521  ;;  %v268_v9 = vmul.f32 %v520_v6, %v240_v60 }
 0x145   : > { %v283_v8 = vmul.f32 %v518_v2, %v275_v5  ;;  %v269_v10 = vmul.f32 %v522_v7, %v243_v61 }
 0x146   : > { %v276_v12 = vsub.f32 2.0, %v268_v9 }
 0x147   : > { %v291_v11 = vmul.f32 %v283_v8, %v237_v59  ;;  %v524_v13 = vpop.eup %523  ;;  %v277_v14 = vsub.f32 2.0, %v269_v10 }
 0x148   : > { %v526_v15 = vpop.eup %525  ;;  %v284_v17 = vmul.f32 %v520_v6, %v276_v12  ;;  %v271_v18 = vmul.f32 %v524_v13, %v249_v62 }
 0x149   : > { %v299_v16 = vsub.f32 2.0, %v291_v11  ;;  %v285_v19 = vmul.f32 %v522_v7, %v277_v14  ;;  %v270_v20 = vmul.f32 %v526_v15, %v246_v63 }
 0x14a   : > { %v292_v22 = vmul.f32 %v284_v17, %v240_v60  ;;  %v279_v23 = vsub.f32 2.0, %v271_v18 }
 0x14b   : > { %v307_v21 = vmul.f32 %v299_v16, %v283_v8  ;;  %v528_v24 = vpop.eup %527  ;;  %v293_v25 = vmul.f32 %v285_v19, %v243_v61  ;;  %v278_v26 = vsub.f32 2.0, %v270_v20 }
 0x14c   : > { %v530_v27 = vpop.eup %529  ;;  %v300_v29 = vsub.f32 2.0, %v292_v22  ;;  %v287_v30 = vmul.f32 %v524_v13, %v279_v23  ;;  %v273_v31 = vmul.f32 %v528_v24, %v255_v0 }
 0x14d   : > { %v315_v28 = vmul.f32 %v687_v44, %v307_v21  ;;  %v301_v32 = vsub.f32 2.0, %v293_v25  ;;  %v286_v33 = vmul.f32 %v526_v15, %v278_v26  ;;  %v272_v34 = vmul.f32 %v530_v27, %v252_v1 }
 0x14e   : > { %v308_v35 = vmul.f32 %v300_v29, %v284_v17  ;;  %v295_v36 = vmul.f32 %v287_v30, %v249_v62  ;;  %v281_v37 = vsub.f32 2.0, %v273_v31 }
 0x14f   : > { %323 = vst.msk [vmem:[%s724_s27] sm:$0xff] %vm234_vm0, %v315_v28  ;;  %v309_v39 = vmul.f32 %v301_v32, %v285_v19  ;;  %v294_v40 = vmul.f32 %v286_v33, %v246_v63  ;;  %v280_v41 = vsub.f32 2.0, %v272_v34 }
 0x150   : > { %v532_v38 = vpop.eup %531  ;;  %v316_v42 = vmul.f32 %v693_v47, %v308_v35  ;;  %v303_v44 = vsub.f32 2.0, %v295_v36  ;;  %v289_v45 = vmul.f32 %v528_v24, %v281_v37 }
 0x151   : > { %v274_v46 = vmul.f32 %v532_v38, %v717_v4  ;;  %v317_v48 = vmul.f32 %v685_v43, %v309_v39  ;;  %v302_v51 = vsub.f32 2.0, %v294_v40  ;;  %v288_v52 = vmul.f32 %v530_v27, %v280_v41 }
 0x152   : > { %324 = vst.msk [vmem:[%s724_s27 + $0x8] sm:$0xff] %vm234_vm0, %v316_v42  ;;  %v311_v55 = vmul.f32 %v303_v44, %v287_v30  ;;  %v297_v56 = vmul.f32 %v289_v45, %v255_v0 }
 0x153   : > { %v282_v58 = vsub.f32 2.0, %v274_v46  ;;  %325 = vst.msk [vmem:[%s724_s27 + $0x10] sm:$0xff] %vm234_vm0, %v317_v48  ;;  %v310_v47 = vmul.f32 %v302_v51, %v286_v33  ;;  %v296_v59 = vmul.f32 %v288_v52, %v252_v1 }
 0x154   : > { %v319_v60 = vmul.f32 %v699_v50, %v311_v55  ;;  %v305_v61 = vsub.f32 2.0, %v297_v56 }
 0x155   : > { %v290_v43 = vmul.f32 %v532_v38, %v282_v58  ;;  %v318_v62 = vmul.f32 %v697_v49, %v310_v47  ;;  %v304_v63 = vsub.f32 2.0, %v296_v59 }
 0x156   : > { %327 = vst.msk [vmem:[%s724_s27 + $0x20] sm:$0xff] %vm234_vm0, %v319_v60  ;;  %v313_v0 = vmul.f32 %v305_v61, %v289_v45 }
 0x157   : > { %v298_v2 = vmul.f32 %v290_v43, %v717_v4  ;;  %326 = vst.msk [vmem:[%s724_s27 + $0x18] sm:$0xff] %vm234_vm0, %v318_v62  ;;  %v312_v3 = vmul.f32 %v304_v63, %v288_v52 }
 0x158   : > { %v321_v1 = vmul.f32 %v707_v54, %v313_v0 }
 0x159   : > { %v306_v50 = vsub.f32 2.0, %v298_v2  ;;  %v320_v5 = vmul.f32 %v705_v53, %v312_v3 }
 0x15a   : > { %329 = vst.msk [vmem:[%s724_s27 + $0x30] sm:$0xff] %vm234_vm0, %v321_v1 }
 0x15b   : > { %v314_v49 = vmul.f32 %v306_v50, %v290_v43  ;;  %328 = vst.msk [vmem:[%s724_s27 + $0x28] sm:$0xff] %vm234_vm0, %v320_v5 }
 0x15d   : > { %v322_v54 = vmul.f32 %v713_v57, %v314_v49 }
 0x15f   : > { %330 = vst.msk [vmem:[%s724_s27 + $0x38] sm:$0xff] %vm234_vm0, %v322_v54 }
 0x160   : > { %546 = shalt.err (!%p543_p5)
}
 0x161   : > { %s547_s15 = scalar_lea.hbm %s753_s3, 1024  ;;  %s551_s21 = scalar_lea.hbm %s808_s1, 2048 }
 0x162   : > { %p548_p6 = scmp.ne.s32.totalorder %s753_s3, %s547_s15  ;;  %p552_p10 = scmp.lt.s32.totalorder %s753_s3, %s808_s1 }
 0x163   : > { %p553_p11 = scmp.lt.s32.totalorder %s551_s21, %s547_s15 }
 0x164   : > { %p549_p7 = pnand %p548_p6, %p665_p4 }
 0x165   : > { %p554_p12 = por %p553_p11, %p552_p10 }
 0x166   : > { %p550_p9 = pneg %p549_p7 }
 0x168   : > { %p555_p13 = pnand %p554_p12, %p550_p9 }
 0x16a   : > { %558 = shalt.err (!%p555_p13)
}
 0x16b   : > { %s613_s24 = smov 128   ;;  %s614_s25 = smov 8  }
 0x16c   : > { %441 = dma.vmem_to_hbm [thread:$0]  (%p665_p4), %s755_s29, 1024, %s753_s3, %s762_s4, %s613_s24, %s613_s24, %s614_s25  }
 0x16d PF: > { %p447_p0 = scmp.ge.s32.totalorder %s609_s11, 2  ;;  %s362_s26 = sand.u32 1, %s589_s6  }
 0x16e   : > { %s363_s27 = scalar_lea.sflag [#allocation3], %s362_s26 }
 0x16f   : > { %p444_p1 = pnand %p447_p0, %p672_p8 }
 0x171   : > { %p445_p2 = pneg %p444_p1 }
 0x173   : > { %584 = dma.done.wait (%p445_p2), %s363_s27, 1024  }
 0x174   : > { %586 = vsyncadd (%p445_p2), %s363_s27, 4294966272  ;;  %s14_s11 = sadd.s32 1, %s609_s11   ;;  %s811_s6 = smov %s593_s7 }
 0x175   : > { %p11_p3 = scmp.ge.s32.totalorder %s14_s11, 4   ;;  %s812_s7 = smov %s597_s8 }
 0x176   : > { %s813_s8 = smov %s678_s19  ;;  %s814_s9 = smov %s605_s10 }
 0x177   : > { %s815_s10 = smov %s817_s14  ;;  %13 = sbr.rel (!%p11_p3) target bundleno = 4 (0x4), region = 59 }
 0x17c   :  { %368 = vsyncpa [#allocation3], 1 }
 0x17d   :  { %370 = vsyncpa [#allocation3 + $0x1], 1 }

</bundles_post_ra>
